<compile_context>
chip_gen: v7x
topology: tpu7x:2x2x1
jax: 0.10.0
libtpu: 0.0.40
codegen_flags: <defaults>
</compile_context>

<pallas_src>
import functools

import jax
import jax.numpy as jnp
from jax.experimental import pallas as pl
from jax.experimental.pallas import tpu as pltpu

NEG_SLOPE = 0.01  # F.leaky_relu default

D_IN, D_H1, D_H2 = 768, 512, 256


def _leaky_relu(x):
    return jnp.where(x > 0, x, NEG_SLOPE * x)


def _round_up(n, m):
    return ((n + m - 1) // m) * m


def mlp_kernel(x_ref, w1_ref, w2_ref, wo_ref, out_ref, feat_ref):
    # x_ref : (TB, 768) f32        w1_ref: (768, 512) bf16
    # w2_ref: (512, 256) bf16      wo_ref: (1, 256)  f32
    # out_ref: (TB, 1) f32         feat_ref: (TB, 256) f32
    x = x_ref[...].astype(jnp.bfloat16)                                    # VPU cast
    h1 = jnp.dot(x, w1_ref[...], preferred_element_type=jnp.float32)      # (TB, 512)
    h1 = _leaky_relu(h1)
    h2 = jnp.dot(h1.astype(jnp.bfloat16), w2_ref[...],
                 preferred_element_type=jnp.float32)                       # (TB, 256)
    h2 = _leaky_relu(h2)
    feat_ref[...] = h2
    # N=1 projection: VPU multiply + lane reduce; keeps the MXU out of a
    # nearly-empty (N=1) pass.
    out_ref[...] = jnp.sum(h2 * wo_ref[...], axis=-1, keepdims=True)


@functools.partial(jax.jit, static_argnames=("tb",))
def net_for_table(x, w1, w2, wo, *, tb=512):
    """Fused forward pass.

    x : (B, 768) float32 activations.
    w1: (512, 768), w2: (256, 512), wo: (1, 256)  -- torch nn.Linear layout.
    Returns (out (B, 1) f32, feat (B, 256) f32), matching the PyTorch module.
    """
    B, d_in = x.shape
    assert d_in == D_IN
    assert w1.shape == (D_H1, D_IN) and w2.shape == (D_H2, D_H1) and wo.shape == (1, D_H2)

    # Weights: transpose to matmul layout, bf16 for the MXU (f32 accumulation
    # requested inside the kernel).  ~0.5 M params -> negligible per-call cost.
    w1_t = w1.T.astype(jnp.bfloat16)   # (768, 512)
    w2_t = w2.T.astype(jnp.bfloat16)   # (512, 256)
    wo_f = wo.astype(jnp.float32)      # (1, 256), consumed by the VPU reduce

    # Batch tile: multiple of 8 sublanes, capped so the grid divides evenly.
    tb = min(tb, _round_up(B, 8))
    b_pad = _round_up(B, tb)
    x_p = jnp.pad(x, ((0, b_pad - B), (0, 0))) if b_pad != B else x
    grid = (b_pad // tb,)

    flops = 2 * b_pad * (D_IN * D_H1 + D_H1 * D_H2) + 2 * b_pad * D_H2
    bytes_accessed = (
        b_pad * D_IN * 4                           # x (f32 in)
        + (D_IN * D_H1 + D_H1 * D_H2) * 2 + D_H2 * 4   # weights (resident)
        + b_pad * D_H2 * 4                         # feat out (f32)
        + b_pad * 1 * 4                            # out (f32)
    )

    out, feat = pl.pallas_call(
        mlp_kernel,
        out_shape=(
            jax.ShapeDtypeStruct((b_pad, 1), jnp.float32),      # self.output(x)
            jax.ShapeDtypeStruct((b_pad, D_H2), jnp.float32),   # hidden features x
        ),
        grid=grid,
        in_specs=[
            pl.BlockSpec((tb, D_IN), lambda i: (i, 0)),          # x tiles over batch
            pl.BlockSpec((D_IN, D_H1), lambda i: (0, 0)),        # weights: VMEM-resident
            pl.BlockSpec((D_H1, D_H2), lambda i: (0, 0)),
            pl.BlockSpec((1, D_H2), lambda i: (0, 0)),
        ],
        out_specs=(
            pl.BlockSpec((tb, 1), lambda i: (i, 0)),
            pl.BlockSpec((tb, D_H2), lambda i: (i, 0)),
        ),
        compiler_params=pltpu.CompilerParams(
            dimension_semantics=("parallel",),                   # megacore shard on v7x
        ),
        cost_estimate=pl.CostEstimate(
            flops=flops, transcendentals=0, bytes_accessed=bytes_accessed),
    )(x_p, w1_t, w2_t, wo_f)

    if b_pad != B:
        out, feat = out[:B], feat[:B]
    return out, feat


def init_params(key):
    """Torch-layout weights: W1 (512,768), W2 (256,512), Wo (1,256).

    U(-1/sqrt(fan_in), 1/sqrt(fan_in)), mimicking nn.Linear default init.
    """
    k1, k2, k3 = jax.random.split(key, 3)
    w1 = jax.random.uniform(k1, (D_H1, D_IN), jnp.float32, -1.0, 1.0) / jnp.sqrt(float(D_IN))
    w2 = jax.random.uniform(k2, (D_H2, D_H1), jnp.float32, -1.0, 1.0) / jnp.sqrt(float(D_H1))
    wo = jax.random.uniform(k3, (1, D_H2), jnp.float32, -1.0, 1.0) / jnp.sqrt(float(D_H2))
    return w1, w2, wo


def reference(x, w1, w2, wo):
    h1 = jax.nn.leaky_relu(x @ w1.T, NEG_SLOPE)
    h2 = jax.nn.leaky_relu(h1 @ w2.T, NEG_SLOPE)
    return h2 @ wo.T, h2


if __name__ == "__main__":
    key = jax.random.PRNGKey(0)
    kx, kp = jax.random.split(key)
    B = 8
    x = jax.random.normal(kx, (B, D_IN), jnp.float32)
    w1, w2, wo = init_params(kp)

    out, feat = net_for_table(x, w1, w2, wo)
    jax.block_until_ready((out, feat))

    ref_out, ref_feat = reference(x, w1, w2, wo)
    assert out.shape == (B, 1) and feat.shape == (B, D_H2)
    # bf16 MXU inputs (f32 accumulation) -> loosened tolerance vs. f32 reference.
    assert jnp.allclose(out, ref_out, atol=5e-2, rtol=5e-2)
    assert jnp.allclose(feat, ref_feat, atol=5e-2, rtol=5e-2)

    print("KERNEL_OK")
</pallas_src>

<mosaic_0001>
module attributes {stable_mosaic.version = 11 : i64} {
  func.func @mlp_kernel(%arg0: i32, %arg1: memref<8x768xf32, #tpu.memory_space<vmem>>, %arg2: memref<768x512xbf16, #tpu.memory_space<vmem>>, %arg3: memref<512x256xbf16, #tpu.memory_space<vmem>>, %arg4: memref<1x256xf32, #tpu.memory_space<vmem>>, %arg5: memref<8x1xf32, #tpu.memory_space<vmem>>, %arg6: memref<8x256xf32, #tpu.memory_space<vmem>>) attributes {dimension_semantics = [#tpu.dimension_semantics<parallel>], iteration_bounds = array<i64: 1>, scalar_prefetch = 0 : i64, scratch_operands = 0 : i64, tpu.core_type = #tpu.core_type<tc>, window_params = [{transform_indices = @transform_0, window_bounds = array<i64: 8, 768>}, {pipeline_mode = #tpu.pipeline_mode<synchronous>, transform_indices = @transform_1, window_bounds = array<i64: 768, 512>}, {pipeline_mode = #tpu.pipeline_mode<synchronous>, transform_indices = @transform_2, window_bounds = array<i64: 512, 256>}, {pipeline_mode = #tpu.pipeline_mode<synchronous>, transform_indices = @transform_3, window_bounds = array<i64: 1, 256>}, {transform_indices = @transform_4, window_bounds = array<i64: 8, 1>}, {transform_indices = @transform_5, window_bounds = array<i64: 8, 256>}]} {
    %c0 = arith.constant 0 : index
    %c0_0 = arith.constant 0 : index
    %0 = vector.load %arg1[%c0, %c0_0] : memref<8x768xf32, #tpu.memory_space<vmem>>, vector<8x768xf32>
    %1 = arith.truncf %0 : vector<8x768xf32> to vector<8x768xbf16>
    %c0_1 = arith.constant 0 : index
    %c0_2 = arith.constant 0 : index
    %2 = vector.load %arg2[%c0_1, %c0_2] : memref<768x512xbf16, #tpu.memory_space<vmem>>, vector<768x512xbf16>
    %cst = arith.constant dense<0.000000e+00> : vector<8x512xf32>
    %3 = tpu.matmul %1, %2, %cst {dimension_numbers = #tpu.dot_dimension_numbers<[1], [0], [0], [1], [0, 0, 1, 1], [], []>} : vector<8x768xbf16>, vector<768x512xbf16>, vector<8x512xf32> -> vector<8x512xf32>
    %cst_3 = arith.constant 0.000000e+00 : f32
    %4 = vector.broadcast %cst_3 : f32 to vector<8x512xf32>
    %5 = arith.cmpf ogt, %3, %4 : vector<8x512xf32>
    %cst_4 = arith.constant 0.00999999977 : f32
    %6 = vector.broadcast %cst_4 : f32 to vector<8x512xf32>
    %7 = arith.mulf %6, %3 : vector<8x512xf32>
    %8 = arith.select %5, %3, %7 : vector<8x512xi1>, vector<8x512xf32>
    %9 = arith.truncf %8 : vector<8x512xf32> to vector<8x512xbf16>
    %c0_5 = arith.constant 0 : index
    %c0_6 = arith.constant 0 : index
    %10 = vector.load %arg3[%c0_5, %c0_6] : memref<512x256xbf16, #tpu.memory_space<vmem>>, vector<512x256xbf16>
    %cst_7 = arith.constant dense<0.000000e+00> : vector<8x256xf32>
    %11 = tpu.matmul %9, %10, %cst_7 {dimension_numbers = #tpu.dot_dimension_numbers<[1], [0], [0], [1], [0, 0, 1, 1], [], []>} : vector<8x512xbf16>, vector<512x256xbf16>, vector<8x256xf32> -> vector<8x256xf32>
    %cst_8 = arith.constant 0.000000e+00 : f32
    %12 = vector.broadcast %cst_8 : f32 to vector<8x256xf32>
    %13 = arith.cmpf ogt, %11, %12 : vector<8x256xf32>
    %cst_9 = arith.constant 0.00999999977 : f32
    %14 = vector.broadcast %cst_9 : f32 to vector<8x256xf32>
    %15 = arith.mulf %14, %11 : vector<8x256xf32>
    %16 = arith.select %13, %11, %15 : vector<8x256xi1>, vector<8x256xf32>
    %c0_10 = arith.constant 0 : index
    %c0_11 = arith.constant 0 : index
    %17 = vector.load %arg6[%c0_10, %c0_11] : memref<8x256xf32, #tpu.memory_space<vmem>>, vector<8x256xf32>
    tpu.vector_store %arg6[%c0_10, %c0_11], %16 {strides = array<i32>} : memref<8x256xf32, #tpu.memory_space<vmem>>, vector<8x256xf32>,
    %c0_12 = arith.constant 0 : index
    %c0_13 = arith.constant 0 : index
    %18 = vector.load %arg4[%c0_12, %c0_13] : memref<1x256xf32, #tpu.memory_space<vmem>>, vector<1x256xf32>
    %19 = vector.broadcast %18 : vector<1x256xf32> to vector<8x256xf32>
    %20 = arith.mulf %16, %19 : vector<8x256xf32>
    %cst_14 = arith.constant dense<0.000000e+00> : vector<8xf32>
    %21 = vector.multi_reduction <add>, %20, %cst_14 [1] : vector<8x256xf32> to vector<8xf32>
    %22 = vector.shape_cast %21 : vector<8xf32> to vector<8x1xf32>
    %c0_15 = arith.constant 0 : index
    %c0_16 = arith.constant 0 : index
    %23 = vector.load %arg5[%c0_15, %c0_16] : memref<8x1xf32, #tpu.memory_space<vmem>>, vector<8x1xf32>
    tpu.vector_store %arg5[%c0_15, %c0_16], %22 {strides = array<i32>} : memref<8x1xf32, #tpu.memory_space<vmem>>, vector<8x1xf32>,
    return
  }
  func.func @transform_0(%arg0: i32) -> (i32, i32) {
    %c0_i32 = arith.constant 0 : i32
    %c0_i32_0 = arith.constant 0 : i32
    return %arg0, %c0_i32 : i32, i32
  }
  func.func @transform_1(%arg0: i32) -> (i32, i32) {
    %c0_i32 = arith.constant 0 : i32
    %c0_i32_0 = arith.constant 0 : i32
    %c0_i32_1 = arith.constant 0 : i32
    return %c0_i32, %c0_i32_0 : i32, i32
  }
  func.func @transform_2(%arg0: i32) -> (i32, i32) {
    %c0_i32 = arith.constant 0 : i32
    %c0_i32_0 = arith.constant 0 : i32
    %c0_i32_1 = arith.constant 0 : i32
    return %c0_i32, %c0_i32_0 : i32, i32
  }
  func.func @transform_3(%arg0: i32) -> (i32, i32) {
    %c0_i32 = arith.constant 0 : i32
    %c0_i32_0 = arith.constant 0 : i32
    %c0_i32_1 = arith.constant 0 : i32
    return %c0_i32, %c0_i32_0 : i32, i32
  }
  func.func @transform_4(%arg0: i32) -> (i32, i32) {
    %c0_i32 = arith.constant 0 : i32
    %c0_i32_0 = arith.constant 0 : i32
    return %arg0, %c0_i32 : i32, i32
  }
  func.func @transform_5(%arg0: i32) -> (i32, i32) {
    %c0_i32 = arith.constant 0 : i32
    %c0_i32_0 = arith.constant 0 : i32
    return %arg0, %c0_i32 : i32, i32
  }
}

</mosaic_0001>

<bundles_post_ra>
// kernel: net_for_table.1
= control target key start
LH: loop header
LB: loop body
LE: loop exit
PB: predicated region body
PF: predicated region fallthrough
CT: control target
= control target key end

     0   :  { %s3499_s0 = inlined_call_operand.vmem [shape: f32[8,768], index: 0, kind: input, shape index: {}]   ;;  %s3500_s1 = inlined_call_operand.vmem [shape: bf16[768,512], index: 1, kind: input, shape index: {}]   ;;  %s3501_s2 = inlined_call_operand.vmem [shape: bf16[512,256], index: 2, kind: input, shape index: {}]   ;;  %s3502_s3 = inlined_call_operand.vmem [shape: f32[1,256], index: 3, kind: input, shape index: {}]   ;;  %s3503_s4 = inlined_call_operand.vmem [shape: f32[8,1], index: 4, kind: output, shape index: {0}]   ;;  %s3504_s5 = inlined_call_operand.hbm [shape: f32[8,256], index: 5, kind: output, shape index: {1}]  }
   0x1   :  { %v2232_v0 = vld [vmem:[%s3500_s1 + $0x4] ss:$16 sps:$4 sm:$0xff]   ;;  %v2236_v2 = vld [vmem:[%s3500_s1] ss:$16 sps:$4 sm:$0xff]   ;;  %v21_v46 = vld [vmem:[%s3499_s0 + $0x8] sm:$0xff] }
   0x2   :  { %v2234_v1 = vld [vmem:[%s3500_s1 + $0x204] ss:$16 sps:$4 sm:$0xff]   ;;  %1184 = vmatprep.subr.bf16.mxu1 %v2232_v0  ;;  %v2237_v3 = vld [vmem:[%s3500_s1 + $0x200] ss:$16 sps:$4 sm:$0xff]   ;;  %v2815_v48 = vpack.c.bf16 %v21_v46, %v21_v46  ;;  %v23_v49 = vld [vmem:[%s3499_s0 + $0x18] sm:$0xff] }
   0x3   :  { %1225 = vmatprep.subr.bf16.mxu0 %v2234_v1  ;;  %v2238_v4 = vld [vmem:[%s3500_s1 + $0x24] ss:$16 sps:$4 sm:$0xff]   ;;  %1185 = vmatpush1.bf16.msra.mxu1 %v2236_v2  ;;  %v2242_v6 = vld [vmem:[%s3500_s1 + $0x20] ss:$16 sps:$4 sm:$0xff]   ;;  %v2826_v52 = vpack.c.bf16 %v23_v49, %v23_v49  ;;  %v2385_v49 = vld [vmem:[%s3500_s1 + $0x128] ss:$16 sps:$4 sm:$0xff]  }
   0x4   :  { %1226 = vmatpush1.bf16.msra.mxu0 %v2237_v3  ;;  %v2240_v5 = vld [vmem:[%s3500_s1 + $0x224] ss:$16 sps:$4 sm:$0xff]   ;;  %1186 = vmatprep.subr.bf16.mxu1 %v2238_v4  ;;  %v2243_v7 = vld [vmem:[%s3500_s1 + $0x220] ss:$16 sps:$4 sm:$0xff]  }
   0x5   :  { %1227 = vmatprep.subr.bf16.mxu0 %v2240_v5  ;;  %v2244_v8 = vld [vmem:[%s3500_s1 + $0x44] ss:$16 sps:$4 sm:$0xff]   ;;  %v2248_v10 = vld [vmem:[%s3500_s1 + $0x40] ss:$16 sps:$4 sm:$0xff]   ;;  %1216 = vmatprep.mubr.bf16.mxu1 %v2815_v48 }
   0x6   :  { %v2246_v9 = vld [vmem:[%s3500_s1 + $0x244] ss:$16 sps:$4 sm:$0xff]   ;;  %v2249_v11 = vld [vmem:[%s3500_s1 + $0x240] ss:$16 sps:$4 sm:$0xff]   ;;  %1257 = vmatprep.mubr.bf16.mxu0 %v2826_v52 }
   0x7   :  { %1187 = vmatpush1.bf16.msra.mxu1 %v2242_v6  ;;  %v2250_v12 = vld [vmem:[%s3500_s1 + $0x64] ss:$16 sps:$4 sm:$0xff]   ;;  %v2254_v14 = vld [vmem:[%s3500_s1 + $0x60] ss:$16 sps:$4 sm:$0xff]  }
   0x8   :  { %1228 = vmatpush1.bf16.msra.mxu0 %v2243_v7  ;;  %1188 = vmatprep.subr.bf16.mxu1 %v2244_v8  ;;  %v2252_v13 = vld [vmem:[%s3500_s1 + $0x264] ss:$16 sps:$4 sm:$0xff]   ;;  %v2255_v15 = vld [vmem:[%s3500_s1 + $0x260] ss:$16 sps:$4 sm:$0xff]   ;;  %v2333_v7 = vld [vmem:[%s3500_s1 + $0xc] ss:$16 sps:$4 sm:$0xff]  }
   0x9   :  { %1229 = vmatprep.subr.bf16.mxu0 %v2246_v9  ;;  %v2256_v16 = vld [vmem:[%s3500_s1 + $0x84] ss:$16 sps:$4 sm:$0xff]   ;;  %v2260_v18 = vld [vmem:[%s3500_s1 + $0x80] ss:$16 sps:$4 sm:$0xff]  }
   0xa   :  { %v2258_v17 = vld [vmem:[%s3500_s1 + $0x284] ss:$16 sps:$4 sm:$0xff]   ;;  %v2261_v19 = vld [vmem:[%s3500_s1 + $0x280] ss:$16 sps:$4 sm:$0xff]  }
   0xb   :  { %1189 = vmatpush1.bf16.msra.mxu1 %v2248_v10  ;;  %v2262_v20 = vld [vmem:[%s3500_s1 + $0xa4] ss:$16 sps:$4 sm:$0xff]   ;;  %v2266_v22 = vld [vmem:[%s3500_s1 + $0xa0] ss:$16 sps:$4 sm:$0xff]   ;;  %v2331_v10 = vld [vmem:[%s3500_s1 + $0x8] ss:$16 sps:$4 sm:$0xff]  }
   0xc   :  { %1230 = vmatpush1.bf16.msra.mxu0 %v2249_v11  ;;  %1190 = vmatprep.subr.bf16.mxu1 %v2250_v12  ;;  %v2264_v21 = vld [vmem:[%s3500_s1 + $0x2a4] ss:$16 sps:$4 sm:$0xff]   ;;  %v2267_v23 = vld [vmem:[%s3500_s1 + $0x2a0] ss:$16 sps:$4 sm:$0xff]  }
   0xd   :  { %1231 = vmatprep.subr.bf16.mxu0 %v2252_v13  ;;  %v2268_v24 = vld [vmem:[%s3500_s1 + $0xc4] ss:$16 sps:$4 sm:$0xff]   ;;  %v2272_v26 = vld [vmem:[%s3500_s1 + $0xc0] ss:$16 sps:$4 sm:$0xff]   ;;  %v2339_v13 = vld [vmem:[%s3500_s1 + $0x2c] ss:$16 sps:$4 sm:$0xff]  }
   0xe   :  { %v2270_v25 = vld [vmem:[%s3500_s1 + $0x2c4] ss:$16 sps:$4 sm:$0xff]   ;;  %v2273_v27 = vld [vmem:[%s3500_s1 + $0x2c0] ss:$16 sps:$4 sm:$0xff]  }
   0xf   :  { %1191 = vmatpush1.bf16.msra.mxu1 %v2254_v14  ;;  %v2274_v28 = vld [vmem:[%s3500_s1 + $0xe4] ss:$16 sps:$4 sm:$0xff]   ;;  %v2278_v30 = vld [vmem:[%s3500_s1 + $0xe0] ss:$16 sps:$4 sm:$0xff]  }
  0x10   :  { %1232 = vmatpush1.bf16.msra.mxu0 %v2255_v15  ;;  %1192 = vmatprep.subr.bf16.mxu1 %v2256_v16  ;;  %v2276_v29 = vld [vmem:[%s3500_s1 + $0x2e4] ss:$16 sps:$4 sm:$0xff]   ;;  %v2279_v31 = vld [vmem:[%s3500_s1 + $0x2e0] ss:$16 sps:$4 sm:$0xff]   ;;  %v2337_v15 = vld [vmem:[%s3500_s1 + $0x28] ss:$16 sps:$4 sm:$0xff]  }
  0x11   :  { %1233 = vmatprep.subr.bf16.mxu0 %v2258_v17  ;;  %v2280_v32 = vld [vmem:[%s3500_s1 + $0x104] ss:$16 sps:$4 sm:$0xff]   ;;  %v2284_v34 = vld [vmem:[%s3500_s1 + $0x100] ss:$16 sps:$4 sm:$0xff]   ;;  %v2345_v17 = vld [vmem:[%s3500_s1 + $0x4c] ss:$16 sps:$4 sm:$0xff]  }
  0x12   :  { %v2282_v33 = vld [vmem:[%s3500_s1 + $0x304] ss:$16 sps:$4 sm:$0xff]   ;;  %v2285_v35 = vld [vmem:[%s3500_s1 + $0x300] ss:$16 sps:$4 sm:$0xff]  }
  0x13   :  { %1193 = vmatpush1.bf16.msra.mxu1 %v2260_v18  ;;  %v2286_v36 = vld [vmem:[%s3500_s1 + $0x124] ss:$16 sps:$4 sm:$0xff]   ;;  %v2290_v38 = vld [vmem:[%s3500_s1 + $0x120] ss:$16 sps:$4 sm:$0xff]  }
  0x14   :  { %1234 = vmatpush1.bf16.msra.mxu0 %v2261_v19  ;;  %1194 = vmatprep.subr.bf16.mxu1 %v2262_v20  ;;  %v2288_v37 = vld [vmem:[%s3500_s1 + $0x324] ss:$16 sps:$4 sm:$0xff]   ;;  %v2291_v39 = vld [vmem:[%s3500_s1 + $0x320] ss:$16 sps:$4 sm:$0xff]   ;;  %v2343_v19 = vld [vmem:[%s3500_s1 + $0x48] ss:$16 sps:$4 sm:$0xff]  }
  0x15   :  { %1235 = vmatprep.subr.bf16.mxu0 %v2264_v21  ;;  %v2292_v40 = vld [vmem:[%s3500_s1 + $0x144] ss:$16 sps:$4 sm:$0xff]   ;;  %v2296_v42 = vld [vmem:[%s3500_s1 + $0x140] ss:$16 sps:$4 sm:$0xff]   ;;  %v2351_v21 = vld [vmem:[%s3500_s1 + $0x6c] ss:$16 sps:$4 sm:$0xff]  }
  0x16   :  { %v2294_v41 = vld [vmem:[%s3500_s1 + $0x344] ss:$16 sps:$4 sm:$0xff]   ;;  %v2297_v43 = vld [vmem:[%s3500_s1 + $0x340] ss:$16 sps:$4 sm:$0xff]  }
  0x17   :  { %1195 = vmatpush1.bf16.msra.mxu1 %v2266_v22  ;;  %v2298_v44 = vld [vmem:[%s3500_s1 + $0x164] ss:$16 sps:$4 sm:$0xff]   ;;  %v2302_v47 = vld [vmem:[%s3500_s1 + $0x160] ss:$16 sps:$4 sm:$0xff]  }
  0x18   :  { %1236 = vmatpush1.bf16.msra.mxu0 %v2267_v23  ;;  %1196 = vmatprep.subr.bf16.mxu1 %v2268_v24  ;;  %v2300_v45 = vld [vmem:[%s3500_s1 + $0x364] ss:$16 sps:$4 sm:$0xff]   ;;  %v2303_v50 = vld [vmem:[%s3500_s1 + $0x360] ss:$16 sps:$4 sm:$0xff]   ;;  %v2349_v23 = vld [vmem:[%s3500_s1 + $0x68] ss:$16 sps:$4 sm:$0xff]  }
  0x19   :  { %1237 = vmatprep.subr.bf16.mxu0 %v2270_v25  ;;  %v2304_v51 = vld [vmem:[%s3500_s1 + $0x184] ss:$16 sps:$4 sm:$0xff]   ;;  %v2308_v54 = vld [vmem:[%s3500_s1 + $0x180] ss:$16 sps:$4 sm:$0xff]   ;;  %v2357_v25 = vld [vmem:[%s3500_s1 + $0x8c] ss:$16 sps:$4 sm:$0xff]  }
  0x1a   :  { %v2306_v53 = vld [vmem:[%s3500_s1 + $0x384] ss:$16 sps:$4 sm:$0xff]   ;;  %v2309_v55 = vld [vmem:[%s3500_s1 + $0x380] ss:$16 sps:$4 sm:$0xff]  }
  0x1b   :  { %1197 = vmatpush1.bf16.msra.mxu1 %v2272_v26  ;;  %v2310_v56 = vld [vmem:[%s3500_s1 + $0x1a4] ss:$16 sps:$4 sm:$0xff]   ;;  %v2314_v58 = vld [vmem:[%s3500_s1 + $0x1a0] ss:$16 sps:$4 sm:$0xff]  }
  0x1c   :  { %1238 = vmatpush1.bf16.msra.mxu0 %v2273_v27  ;;  %1198 = vmatprep.subr.bf16.mxu1 %v2274_v28  ;;  %v2312_v57 = vld [vmem:[%s3500_s1 + $0x3a4] ss:$16 sps:$4 sm:$0xff]   ;;  %v2315_v59 = vld [vmem:[%s3500_s1 + $0x3a0] ss:$16 sps:$4 sm:$0xff]   ;;  %v2355_v27 = vld [vmem:[%s3500_s1 + $0x88] ss:$16 sps:$4 sm:$0xff]  }
  0x1d   :  { %1239 = vmatprep.subr.bf16.mxu0 %v2276_v29  ;;  %v2316_v60 = vld [vmem:[%s3500_s1 + $0x1c4] ss:$16 sps:$4 sm:$0xff]   ;;  %v2320_v62 = vld [vmem:[%s3500_s1 + $0x1c0] ss:$16 sps:$4 sm:$0xff]   ;;  %v2363_v29 = vld [vmem:[%s3500_s1 + $0xac] ss:$16 sps:$4 sm:$0xff]  }
  0x1e   :  { %v2318_v61 = vld [vmem:[%s3500_s1 + $0x3c4] ss:$16 sps:$4 sm:$0xff]   ;;  %v2321_v63 = vld [vmem:[%s3500_s1 + $0x3c0] ss:$16 sps:$4 sm:$0xff]  }
  0x1f   :  { %1199 = vmatpush1.bf16.msra.mxu1 %v2278_v30  ;;  %v2322_v0 = vld [vmem:[%s3500_s1 + $0x1e4] ss:$16 sps:$4 sm:$0xff]   ;;  %v2326_v2 = vld [vmem:[%s3500_s1 + $0x1e0] ss:$16 sps:$4 sm:$0xff]  }
  0x20   :  { %1240 = vmatpush1.bf16.msra.mxu0 %v2279_v31  ;;  %1200 = vmatprep.subr.bf16.mxu1 %v2280_v32  ;;  %v2324_v1 = vld [vmem:[%s3500_s1 + $0x3e4] ss:$16 sps:$4 sm:$0xff]   ;;  %v2327_v3 = vld [vmem:[%s3500_s1 + $0x3e0] ss:$16 sps:$4 sm:$0xff]   ;;  %v2361_v31 = vld [vmem:[%s3500_s1 + $0xa8] ss:$16 sps:$4 sm:$0xff]  }
  0x21   :  { %1241 = vmatprep.subr.bf16.mxu0 %v2282_v33  ;;  %v20_v4 = vld [vmem:[%s3499_s0] sm:$0xff]  ;;  %v22_v6 = vld [vmem:[%s3499_s0 + $0x10] sm:$0xff]  ;;  %v2369_v33 = vld [vmem:[%s3500_s1 + $0xcc] ss:$16 sps:$4 sm:$0xff]  }
  0x22   :  { %v2330_v5 = vld [vmem:[%s3500_s1 + $0x404] ss:$16 sps:$4 sm:$0xff]   ;;  %v2887_v8 = vpack.c.bf16 %v20_v4, %v20_v4  ;;  %v2328_v9 = vld [vmem:[%s3500_s1 + $0x400] ss:$16 sps:$4 sm:$0xff]   ;;  %v2895_v11 = vpack.c.bf16 %v22_v6, %v22_v6  ;;  %v2417_v4 = vld [vmem:[%s3500_s1 + $0x1cc] ss:$16 sps:$4 sm:$0xff]  }
  0x23   :  { %1201 = vmatpush1.bf16.msra.mxu1 %v2284_v34  ;;  %v2336_v12 = vld [vmem:[%s3500_s1 + $0x424] ss:$16 sps:$4 sm:$0xff]   ;;  %v2334_v14 = vld [vmem:[%s3500_s1 + $0x420] ss:$16 sps:$4 sm:$0xff]   ;;  %v25_v34 = vld [vmem:[%s3499_s0 + $0x28] sm:$0xff] }
  0x24   :  { %1242 = vmatpush1.bf16.msra.mxu0 %v2285_v35  ;;  %1202 = vmatprep.subr.bf16.mxu1 %v2286_v36  ;;  %v2342_v16 = vld [vmem:[%s3500_s1 + $0x444] ss:$16 sps:$4 sm:$0xff]   ;;  %v2340_v18 = vld [vmem:[%s3500_s1 + $0x440] ss:$16 sps:$4 sm:$0xff]   ;;  %v2969_v35 = vpack.c.bf16 %v25_v34, %v25_v34  ;;  %v2415_v6 = vld [vmem:[%s3500_s1 + $0x1c8] ss:$16 sps:$4 sm:$0xff]  }
  0x25   :  { %1243 = vmatprep.subr.bf16.mxu0 %v2288_v37  ;;  %v2348_v20 = vld [vmem:[%s3500_s1 + $0x464] ss:$16 sps:$4 sm:$0xff]   ;;  %v2346_v22 = vld [vmem:[%s3500_s1 + $0x460] ss:$16 sps:$4 sm:$0xff]   ;;  %v2367_v37 = vld [vmem:[%s3500_s1 + $0xc8] ss:$16 sps:$4 sm:$0xff]  }
  0x26   :  { %v2354_v24 = vld [vmem:[%s3500_s1 + $0x484] ss:$16 sps:$4 sm:$0xff]   ;;  %v2352_v26 = vld [vmem:[%s3500_s1 + $0x480] ss:$16 sps:$4 sm:$0xff]  }
  0x27   :  { %1203 = vmatpush1.bf16.msra.mxu1 %v2290_v38  ;;  %v2360_v28 = vld [vmem:[%s3500_s1 + $0x4a4] ss:$16 sps:$4 sm:$0xff]   ;;  %v2358_v30 = vld [vmem:[%s3500_s1 + $0x4a0] ss:$16 sps:$4 sm:$0xff]  }
  0x28   :  { %1244 = vmatpush1.bf16.msra.mxu0 %v2291_v39  ;;  %1204 = vmatprep.subr.bf16.mxu1 %v2292_v40  ;;  %v2366_v32 = vld [vmem:[%s3500_s1 + $0x4c4] ss:$16 sps:$4 sm:$0xff]   ;;  %v2364_v36 = vld [vmem:[%s3500_s1 + $0x4c0] ss:$16 sps:$4 sm:$0xff]   ;;  %v2375_v39 = vld [vmem:[%s3500_s1 + $0xec] ss:$16 sps:$4 sm:$0xff]  }
  0x29   :  { %1245 = vmatprep.subr.bf16.mxu0 %v2294_v41  ;;  %v2372_v38 = vld [vmem:[%s3500_s1 + $0x4e4] ss:$16 sps:$4 sm:$0xff]   ;;  %v2370_v40 = vld [vmem:[%s3500_s1 + $0x4e0] ss:$16 sps:$4 sm:$0xff]   ;;  %v2373_v41 = vld [vmem:[%s3500_s1 + $0xe8] ss:$16 sps:$4 sm:$0xff]  }
  0x2a   :  { %v2384_v46 = vld [vmem:[%s3500_s1 + $0x524] ss:$16 sps:$4 sm:$0xff]  }
  0x2b   :  { %1205 = vmatpush1.bf16.msra.mxu1 %v2296_v42  ;;  %v2378_v42 = vld [vmem:[%s3500_s1 + $0x504] ss:$16 sps:$4 sm:$0xff]  }
  0x2c   :  { %1246 = vmatpush1.bf16.msra.mxu0 %v2297_v43  ;;  %1206 = vmatprep.subr.bf16.mxu1 %v2298_v44  ;;  %v2381_v43 = vld [vmem:[%s3500_s1 + $0x10c] ss:$16 sps:$4 sm:$0xff]   ;;  %v2376_v44 = vld [vmem:[%s3500_s1 + $0x500] ss:$16 sps:$4 sm:$0xff]  }
  0x2d   :  { %1247 = vmatprep.subr.bf16.mxu0 %v2300_v45  ;;  %v2379_v45 = vld [vmem:[%s3500_s1 + $0x108] ss:$16 sps:$4 sm:$0xff]  }
  0x2f   :  { %1207 = vmatpush1.bf16.msra.mxu1 %v2302_v47  ;;  %v2387_v47 = vld [vmem:[%s3500_s1 + $0x12c] ss:$16 sps:$4 sm:$0xff]  }
  0x30   :  { %1248 = vmatpush1.bf16.msra.mxu0 %v2303_v50  ;;  %1208 = vmatprep.subr.bf16.mxu1 %v2304_v51  ;;  %v2390_v50 = vld [vmem:[%s3500_s1 + $0x544] ss:$16 sps:$4 sm:$0xff]   ;;  %v2393_v51 = vld [vmem:[%s3500_s1 + $0x14c] ss:$16 sps:$4 sm:$0xff]  }
  0x31   :  { %1249 = vmatprep.subr.bf16.mxu0 %v2306_v53  ;;  %v2388_v53 = vld [vmem:[%s3500_s1 + $0x540] ss:$16 sps:$4 sm:$0xff]  }
  0x33   :  { %1209 = vmatpush1.bf16.msra.mxu1 %v2308_v54  ;;  %v2391_v54 = vld [vmem:[%s3500_s1 + $0x148] ss:$16 sps:$4 sm:$0xff]  }
  0x34   :  { %1250 = vmatpush1.bf16.msra.mxu0 %v2309_v55  ;;  %1210 = vmatprep.subr.bf16.mxu1 %v2310_v56  ;;  %v2396_v55 = vld [vmem:[%s3500_s1 + $0x564] ss:$16 sps:$4 sm:$0xff]   ;;  %v2399_v56 = vld [vmem:[%s3500_s1 + $0x16c] ss:$16 sps:$4 sm:$0xff]  }
  0x35   :  { %1251 = vmatprep.subr.bf16.mxu0 %v2312_v57  ;;  %v2394_v57 = vld [vmem:[%s3500_s1 + $0x560] ss:$16 sps:$4 sm:$0xff]  }
  0x37   :  { %1211 = vmatpush1.bf16.msra.mxu1 %v2314_v58  ;;  %v2397_v58 = vld [vmem:[%s3500_s1 + $0x168] ss:$16 sps:$4 sm:$0xff]  }
  0x38   :  { %1252 = vmatpush1.bf16.msra.mxu0 %v2315_v59  ;;  %1212 = vmatprep.subr.bf16.mxu1 %v2316_v60  ;;  %v2402_v59 = vld [vmem:[%s3500_s1 + $0x584] ss:$16 sps:$4 sm:$0xff]   ;;  %v2405_v60 = vld [vmem:[%s3500_s1 + $0x18c] ss:$16 sps:$4 sm:$0xff]  }
  0x39   :  { %1253 = vmatprep.subr.bf16.mxu0 %v2318_v61  ;;  %v2400_v61 = vld [vmem:[%s3500_s1 + $0x580] ss:$16 sps:$4 sm:$0xff]  }
  0x3b   :  { %1213 = vmatpush1.bf16.msra.mxu1 %v2320_v62  ;;  %v2403_v62 = vld [vmem:[%s3500_s1 + $0x188] ss:$16 sps:$4 sm:$0xff]  }
  0x3c   :  { %1254 = vmatpush1.bf16.msra.mxu0 %v2321_v63  ;;  %1214 = vmatprep.subr.bf16.mxu1 %v2322_v0  ;;  %v2408_v63 = vld [vmem:[%s3500_s1 + $0x5a4] ss:$16 sps:$4 sm:$0xff]   ;;  %v2411_v0 = vld [vmem:[%s3500_s1 + $0x1ac] ss:$16 sps:$4 sm:$0xff]  }
  0x3d   :  { %1255 = vmatprep.subr.bf16.mxu0 %v2324_v1  ;;  %v2406_v1 = vld [vmem:[%s3500_s1 + $0x5a0] ss:$16 sps:$4 sm:$0xff]  }
  0x3f   :  { %1215 = vmatpush1.bf16.msra.mxu1 %v2326_v2  ;;  %v2409_v2 = vld [vmem:[%s3500_s1 + $0x1a8] ss:$16 sps:$4 sm:$0xff]  }
  0x40   :  { %1256 = vmatpush1.bf16.msra.mxu0 %v2327_v3  ;;  %1307 = vmatprep.subr.bf16.mxu1 %v2333_v7  ;;  %v2414_v3 = vld [vmem:[%s3500_s1 + $0x5c4] ss:$16 sps:$4 sm:$0xff]  }
  0x41   :  { %1266 = vmatprep.subr.bf16.mxu0 %v2330_v5  ;;  %v2412_v5 = vld [vmem:[%s3500_s1 + $0x5c0] ss:$16 sps:$4 sm:$0xff]   ;;  %v2420_v7 = vld [vmem:[%s3500_s1 + $0x5e4] ss:$16 sps:$4 sm:$0xff]  }
  0x42   :  { %1217 = vmatmul.mubr.bf16.vlgmr.msra.gmra.mrb[0].mxu1 %v2887_v8 }
  0x43   :  { %1258 = vmatmul.mubr.bf16.vlgmr.msra.gmra.mrb[0].mxu0 %v2895_v11  ;;  %1308 = vmatpush1.bf16.msra.mxu1 %v2331_v10  ;;  %v2418_v10 = vld [vmem:[%s3500_s1 + $0x5e0] ss:$16 sps:$4 sm:$0xff]  }
  0x44   :  { %1267 = vmatpush1.bf16.msra.mxu0 %v2328_v9  ;;  %1309 = vmatprep.subr.bf16.mxu1 %v2339_v13  ;;  %v2423_v9 = vld [vmem:[%s3500_s1 + $0x1ec] ss:$16 sps:$4 sm:$0xff]   ;;  %v24_v13 = vld [vmem:[%s3499_s0 + $0x20] sm:$0xff] }
  0x45   :  { %1268 = vmatprep.subr.bf16.mxu0 %v2336_v12  ;;  %1339 = vmatprep.mubr.bf16.mxu1 %v2815_v48  ;;  %v2382_v48 = vld [vmem:[%s3500_s1 + $0x520] ss:$16 sps:$4 sm:$0xff]   ;;  %v2421_v12 = vld [vmem:[%s3500_s1 + $0x1e8] ss:$16 sps:$4 sm:$0xff]  }
  0x46   :  { %1298 = vmatprep.mubr.bf16.mxu0 %v2969_v35 }
  0x47   :  { %1310 = vmatpush1.bf16.msra.mxu1 %v2337_v15  ;;  %v3092_v15 = vpack.c.bf16 %v24_v13, %v24_v13 }
  0x48   :  { %1269 = vmatpush1.bf16.msra.mxu0 %v2334_v14  ;;  %1311 = vmatprep.subr.bf16.mxu1 %v2345_v17  ;;  %v2426_v14 = vld [vmem:[%s3500_s1 + $0x20c] ss:$16 sps:$4 sm:$0xff]  }
  0x49   :  { %1270 = vmatprep.subr.bf16.mxu0 %v2342_v16  ;;  %v2424_v16 = vld [vmem:[%s3500_s1 + $0x208] ss:$16 sps:$4 sm:$0xff]   ;;  %v2429_v17 = vld [vmem:[%s3500_s1 + $0x22c] ss:$16 sps:$4 sm:$0xff]  }
  0x4b   :  { %1312 = vmatpush1.bf16.msra.mxu1 %v2343_v19  ;;  %v2432_v19 = vld [vmem:[%s3500_s1 + $0x24c] ss:$16 sps:$4 sm:$0xff]  }
  0x4c   :  { %1271 = vmatpush1.bf16.msra.mxu0 %v2340_v18  ;;  %1313 = vmatprep.subr.bf16.mxu1 %v2351_v21  ;;  %v2427_v18 = vld [vmem:[%s3500_s1 + $0x228] ss:$16 sps:$4 sm:$0xff]   ;;  %v2435_v21 = vld [vmem:[%s3500_s1 + $0x26c] ss:$16 sps:$4 sm:$0xff]  }
  0x4d   :  { %1272 = vmatprep.subr.bf16.mxu0 %v2348_v20  ;;  %v2430_v20 = vld [vmem:[%s3500_s1 + $0x248] ss:$16 sps:$4 sm:$0xff]  }
  0x4f   :  { %1314 = vmatpush1.bf16.msra.mxu1 %v2349_v23  ;;  %v2441_v23 = vld [vmem:[%s3500_s1 + $0x2ac] ss:$16 sps:$4 sm:$0xff]  }
  0x50   :  { %1273 = vmatpush1.bf16.msra.mxu0 %v2346_v22  ;;  %1315 = vmatprep.subr.bf16.mxu1 %v2357_v25  ;;  %v2438_v22 = vld [vmem:[%s3500_s1 + $0x28c] ss:$16 sps:$4 sm:$0xff]  }
  0x51   :  { %1274 = vmatprep.subr.bf16.mxu0 %v2354_v24  ;;  %v2439_v24 = vld [vmem:[%s3500_s1 + $0x2a8] ss:$16 sps:$4 sm:$0xff]   ;;  %v2444_v25 = vld [vmem:[%s3500_s1 + $0x2cc] ss:$16 sps:$4 sm:$0xff]  }
  0x53   :  { %1316 = vmatpush1.bf16.msra.mxu1 %v2355_v27 }
  0x54   :  { %1275 = vmatpush1.bf16.msra.mxu0 %v2352_v26  ;;  %1317 = vmatprep.subr.bf16.mxu1 %v2363_v29 }
  0x55   :  { %1276 = vmatprep.subr.bf16.mxu0 %v2360_v28 }
  0x57   :  { %1318 = vmatpush1.bf16.msra.mxu1 %v2361_v31 }
  0x58   :  { %1277 = vmatpush1.bf16.msra.mxu0 %v2358_v30  ;;  %1319 = vmatprep.subr.bf16.mxu1 %v2369_v33 }
  0x59   :  { %1278 = vmatprep.subr.bf16.mxu0 %v2366_v32 }
  0x5b   :  { %1320 = vmatpush1.bf16.msra.mxu1 %v2367_v37 }
  0x5c   :  { %1279 = vmatpush1.bf16.msra.mxu0 %v2364_v36  ;;  %1321 = vmatprep.subr.bf16.mxu1 %v2375_v39 }
  0x5d   :  { %1280 = vmatprep.subr.bf16.mxu0 %v2372_v38 }
  0x5f   :  { %1322 = vmatpush1.bf16.msra.mxu1 %v2373_v41 }
  0x60   :  { %1281 = vmatpush1.bf16.msra.mxu0 %v2370_v40  ;;  %1323 = vmatprep.subr.bf16.mxu1 %v2381_v43 }
  0x61   :  { %1282 = vmatprep.subr.bf16.mxu0 %v2378_v42 }
  0x63   :  { %1324 = vmatpush1.bf16.msra.mxu1 %v2379_v45 }
  0x64   :  { %1283 = vmatpush1.bf16.msra.mxu0 %v2376_v44  ;;  %1325 = vmatprep.subr.bf16.mxu1 %v2387_v47 }
  0x65   :  { %1284 = vmatprep.subr.bf16.mxu0 %v2384_v46 }
  0x67   :  { %1326 = vmatpush1.bf16.msra.mxu1 %v2385_v49 }
  0x68   :  { %1285 = vmatpush1.bf16.msra.mxu0 %v2382_v48  ;;  %1327 = vmatprep.subr.bf16.mxu1 %v2393_v51 }
  0x69   :  { %1286 = vmatprep.subr.bf16.mxu0 %v2390_v50 }
  0x6b   :  { %1328 = vmatpush1.bf16.msra.mxu1 %v2391_v54 }
  0x6c   :  { %1287 = vmatpush1.bf16.msra.mxu0 %v2388_v53  ;;  %1329 = vmatprep.subr.bf16.mxu1 %v2399_v56 }
  0x6d   :  { %1288 = vmatprep.subr.bf16.mxu0 %v2396_v55 }
  0x6f   :  { %1330 = vmatpush1.bf16.msra.mxu1 %v2397_v58 }
  0x70   :  { %1289 = vmatpush1.bf16.msra.mxu0 %v2394_v57  ;;  %1331 = vmatprep.subr.bf16.mxu1 %v2405_v60 }
  0x71   :  { %1290 = vmatprep.subr.bf16.mxu0 %v2402_v59 }
  0x73   :  { %1332 = vmatpush1.bf16.msra.mxu1 %v2403_v62 }
  0x74   :  { %1291 = vmatpush1.bf16.msra.mxu0 %v2400_v61  ;;  %1333 = vmatprep.subr.bf16.mxu1 %v2411_v0 }
  0x75   :  { %1292 = vmatprep.subr.bf16.mxu0 %v2408_v63 }
  0x77   :  { %1334 = vmatpush1.bf16.msra.mxu1 %v2409_v2 }
  0x78   :  { %1293 = vmatpush1.bf16.msra.mxu0 %v2406_v1  ;;  %1335 = vmatprep.subr.bf16.mxu1 %v2417_v4 }
  0x79   :  { %1294 = vmatprep.subr.bf16.mxu0 %v2414_v3 }
  0x7b   :  { %1336 = vmatpush1.bf16.msra.mxu1 %v2415_v6 }
  0x7c   :  { %1295 = vmatpush1.bf16.msra.mxu0 %v2412_v5  ;;  %1337 = vmatprep.subr.bf16.mxu1 %v2423_v9 }
  0x7d   :  { %1296 = vmatprep.subr.bf16.mxu0 %v2420_v7 }
  0x7f   :  { %1338 = vmatpush1.bf16.msra.mxu1 %v2421_v12 }
  0x80   :  { %1297 = vmatpush1.bf16.msra.mxu0 %v2418_v10  ;;  %1348 = vmatprep.subr.bf16.mxu1 %v2426_v14 }
  0x82   :  { %1340 = vmatmul.mubr.bf16.vlgmr.msra.gmra.mrb[4].mxu1 %v2887_v8  ;;  %v2433_v8 = vld [vmem:[%s3500_s1 + $0x268] ss:$16 sps:$4 sm:$0xff]  }
  0x83   :  { %1299 = vmatmul.mubr.bf16.vlgmr.msra.gmra.mrb[0].mxu0 %v3092_v15  ;;  %1349 = vmatpush1.bf16.msra.mxu1 %v2424_v16 }
  0x84   :  { %1380 = vmatprep.mubr.bf16.mxu1 %v2826_v52  ;;  %1350 = vmatprep.subr.bf16.mxu1 %v2429_v17  ;;  %v2436_v52 = vld [vmem:[%s3500_s1 + $0x288] ss:$16 sps:$4 sm:$0xff]  }
  0x87   :  { %1351 = vmatpush1.bf16.msra.mxu1 %v2427_v18 }
  0x88   :  { %1352 = vmatprep.subr.bf16.mxu1 %v2432_v19 }
  0x8b   :  { %1353 = vmatpush1.bf16.msra.mxu1 %v2430_v20 }
  0x8c   :  { %1354 = vmatprep.subr.bf16.mxu1 %v2435_v21 }
  0x8f   :  { %1355 = vmatpush1.bf16.msra.mxu1 %v2433_v8 }
  0x90   :  { %1356 = vmatprep.subr.bf16.mxu1 %v2438_v22 }
  0x93   :  { %1357 = vmatpush1.bf16.msra.mxu1 %v2436_v52 }
  0x94   :  { %1358 = vmatprep.subr.bf16.mxu1 %v2441_v23 }
  0x95   :  { %11 = vsyncpa [#allocation3], 0  ;;  %v2442_v26 = vld [vmem:[%s3500_s1 + $0x2c8] ss:$16 sps:$4 sm:$0xff]   ;;  %v2447_v27 = vld [vmem:[%s3500_s1 + $0x2ec] ss:$16 sps:$4 sm:$0xff]  }
  0x96   :  { %v2520_v28 = vld [vmem:[%s3501_s2] ss:$8 sps:$4 sm:$0xff]   ;;  %v2522_v29 = vld [vmem:[%s3501_s2 + $0x4] ss:$8 sps:$4 sm:$0xff]   ;;  %v2525_v30 = vld [vmem:[%s3501_s2 + $0x14] ss:$8 sps:$4 sm:$0xff]  }
  0x97   :  { %1359 = vmatpush1.bf16.msra.mxu1 %v2439_v24  ;;  %1830 = vmatprep.subr.bf16.mxu0 %v2522_v29  ;;  %v2445_v31 = vld [vmem:[%s3500_s1 + $0x2e8] ss:$16 sps:$4 sm:$0xff]   ;;  %v2450_v33 = vld [vmem:[%s3500_s1 + $0x30c] ss:$16 sps:$4 sm:$0xff]  }
  0x98   :  { %1360 = vmatprep.subr.bf16.mxu1 %v2444_v25  ;;  %1831 = vmatpush1.bf16.msra.mxu0 %v2520_v28  ;;  %v2523_v32 = vld [vmem:[%s3501_s2 + $0x10] ss:$8 sps:$4 sm:$0xff]   ;;  %v2528_v34 = vld [vmem:[%s3501_s2 + $0x24] ss:$8 sps:$4 sm:$0xff]   ;;  %v2526_v37 = vld [vmem:[%s3501_s2 + $0x20] ss:$8 sps:$4 sm:$0xff]  }
  0x99   :  { %1832 = vmatprep.subr.bf16.mxu0 %v2525_v30  ;;  %v2448_v36 = vld [vmem:[%s3500_s1 + $0x308] ss:$16 sps:$4 sm:$0xff]   ;;  %v2453_v38 = vld [vmem:[%s3500_s1 + $0x32c] ss:$16 sps:$4 sm:$0xff]  }
  0x9a   :  { %v2531_v39 = vld [vmem:[%s3501_s2 + $0x34] ss:$8 sps:$4 sm:$0xff]   ;;  %v2451_v40 = vld [vmem:[%s3500_s1 + $0x328] ss:$16 sps:$4 sm:$0xff]   ;;  %v2534_v43 = vld [vmem:[%s3501_s2 + $0x44] ss:$8 sps:$4 sm:$0xff]  }
  0x9b   :  { %1361 = vmatpush1.bf16.msra.mxu1 %v2442_v26  ;;  %v2529_v41 = vld [vmem:[%s3501_s2 + $0x30] ss:$8 sps:$4 sm:$0xff]   ;;  %v2456_v42 = vld [vmem:[%s3500_s1 + $0x34c] ss:$16 sps:$4 sm:$0xff]   ;;  %v2532_v45 = vld [vmem:[%s3501_s2 + $0x40] ss:$8 sps:$4 sm:$0xff]  }
  0x9c   :  { %1362 = vmatprep.subr.bf16.mxu1 %v2447_v27  ;;  %1833 = vmatpush1.bf16.msra.mxu0 %v2523_v32  ;;  %v2454_v44 = vld [vmem:[%s3500_s1 + $0x348] ss:$16 sps:$4 sm:$0xff]   ;;  %v2459_v46 = vld [vmem:[%s3500_s1 + $0x36c] ss:$16 sps:$4 sm:$0xff]  }
  0x9d   :  { %1834 = vmatprep.subr.bf16.mxu0 %v2528_v34  ;;  %v2537_v47 = vld [vmem:[%s3501_s2 + $0x54] ss:$8 sps:$4 sm:$0xff]   ;;  %v2457_v48 = vld [vmem:[%s3500_s1 + $0x368] ss:$16 sps:$4 sm:$0xff]   ;;  %v2540_v51 = vld [vmem:[%s3501_s2 + $0x64] ss:$8 sps:$4 sm:$0xff]  }
  0x9e   :  { %v2535_v49 = vld [vmem:[%s3501_s2 + $0x50] ss:$8 sps:$4 sm:$0xff]   ;;  %v2462_v50 = vld [vmem:[%s3500_s1 + $0x38c] ss:$16 sps:$4 sm:$0xff]   ;;  %v2538_v54 = vld [vmem:[%s3501_s2 + $0x60] ss:$8 sps:$4 sm:$0xff]  }
  0x9f   :  { %1363 = vmatpush1.bf16.msra.mxu1 %v2445_v31  ;;  %v2460_v53 = vld [vmem:[%s3500_s1 + $0x388] ss:$16 sps:$4 sm:$0xff]   ;;  %v2465_v55 = vld [vmem:[%s3500_s1 + $0x3ac] ss:$16 sps:$4 sm:$0xff]  }
  0xa0   :  { %1364 = vmatprep.subr.bf16.mxu1 %v2450_v33  ;;  %1835 = vmatpush1.bf16.msra.mxu0 %v2526_v37  ;;  %v2543_v56 = vld [vmem:[%s3501_s2 + $0x74] ss:$8 sps:$4 sm:$0xff]   ;;  %v2463_v57 = vld [vmem:[%s3500_s1 + $0x3a8] ss:$16 sps:$4 sm:$0xff]   ;;  %v2546_v60 = vld [vmem:[%s3501_s2 + $0x84] ss:$8 sps:$4 sm:$0xff]  }
  0xa1   :  { %1836 = vmatprep.subr.bf16.mxu0 %v2531_v39  ;;  %v2541_v58 = vld [vmem:[%s3501_s2 + $0x70] ss:$8 sps:$4 sm:$0xff]   ;;  %v2468_v59 = vld [vmem:[%s3500_s1 + $0x3cc] ss:$16 sps:$4 sm:$0xff]   ;;  %v2544_v62 = vld [vmem:[%s3501_s2 + $0x80] ss:$8 sps:$4 sm:$0xff]  }
  0xa2   :  { %v2466_v61 = vld [vmem:[%s3500_s1 + $0x3c8] ss:$16 sps:$4 sm:$0xff]   ;;  %v2471_v63 = vld [vmem:[%s3500_s1 + $0x3ec] ss:$16 sps:$4 sm:$0xff]  }
  0xa3   :  { %1365 = vmatpush1.bf16.msra.mxu1 %v2448_v36  ;;  %v2549_v0 = vld [vmem:[%s3501_s2 + $0x94] ss:$8 sps:$4 sm:$0xff]   ;;  %v2469_v1 = vld [vmem:[%s3500_s1 + $0x3e8] ss:$16 sps:$4 sm:$0xff]   ;;  %v2552_v4 = vld [vmem:[%s3501_s2 + $0xa4] ss:$8 sps:$4 sm:$0xff]  }
  0xa4   :  { %1366 = vmatprep.subr.bf16.mxu1 %v2453_v38  ;;  %1837 = vmatpush1.bf16.msra.mxu0 %v2529_v41  ;;  %v2547_v2 = vld [vmem:[%s3501_s2 + $0x90] ss:$8 sps:$4 sm:$0xff]   ;;  %v2474_v3 = vld [vmem:[%s3500_s1 + $0x40c] ss:$16 sps:$4 sm:$0xff]   ;;  %v2550_v7 = vld [vmem:[%s3501_s2 + $0xa0] ss:$8 sps:$4 sm:$0xff]  }
  0xa5   :  { %1838 = vmatprep.subr.bf16.mxu0 %v2534_v43  ;;  %v2472_v5 = vld [vmem:[%s3500_s1 + $0x408] ss:$16 sps:$4 sm:$0xff]   ;;  %v2477_v6 = vld [vmem:[%s3500_s1 + $0x42c] ss:$16 sps:$4 sm:$0xff]  }
  0xa6   :  { %v2555_v9 = vld [vmem:[%s3501_s2 + $0xb4] ss:$8 sps:$4 sm:$0xff]   ;;  %v2475_v10 = vld [vmem:[%s3500_s1 + $0x428] ss:$16 sps:$4 sm:$0xff]   ;;  %v2564_v23 = vld [vmem:[%s3501_s2 + $0xe4] ss:$8 sps:$4 sm:$0xff]  }
  0xa7   :  { %1367 = vmatpush1.bf16.msra.mxu1 %v2451_v40  ;;  %v2480_v12 = vld [vmem:[%s3500_s1 + $0x44c] ss:$16 sps:$4 sm:$0xff]   ;;  %v2553_v13 = vld [vmem:[%s3501_s2 + $0xb0] ss:$8 sps:$4 sm:$0xff]   ;;  %v2556_v16 = vld [vmem:[%s3501_s2 + $0xc0] ss:$8 sps:$4 sm:$0xff]  }
  0xa8   :  { %1368 = vmatprep.subr.bf16.mxu1 %v2456_v42  ;;  %1839 = vmatpush1.bf16.msra.mxu0 %v2532_v45  ;;  %v2483_v14 = vld [vmem:[%s3500_s1 + $0x46c] ss:$16 sps:$4 sm:$0xff]   ;;  %v2481_v18 = vld [vmem:[%s3500_s1 + $0x468] ss:$16 sps:$4 sm:$0xff]  }
  0xa9   :  { %1840 = vmatprep.subr.bf16.mxu0 %v2537_v47  ;;  %v2561_v17 = vld [vmem:[%s3501_s2 + $0xd4] ss:$8 sps:$4 sm:$0xff]   ;;  %v2559_v20 = vld [vmem:[%s3501_s2 + $0xd0] ss:$8 sps:$4 sm:$0xff]   ;;  %v2562_v24 = vld [vmem:[%s3501_s2 + $0xe0] ss:$8 sps:$4 sm:$0xff]  }
  0xaa   :  { %v2486_v19 = vld [vmem:[%s3500_s1 + $0x48c] ss:$16 sps:$4 sm:$0xff]   ;;  %v2484_v21 = vld [vmem:[%s3500_s1 + $0x488] ss:$16 sps:$4 sm:$0xff]  }
  0xab   :  { %1369 = vmatpush1.bf16.msra.mxu1 %v2454_v44  ;;  %v2489_v8 = vld [vmem:[%s3500_s1 + $0x4ac] ss:$16 sps:$4 sm:$0xff]   ;;  %v2487_v22 = vld [vmem:[%s3500_s1 + $0x4a8] ss:$16 sps:$4 sm:$0xff]  }
  0xac   :  { %1370 = vmatprep.subr.bf16.mxu1 %v2459_v46  ;;  %1841 = vmatpush1.bf16.msra.mxu0 %v2535_v49  ;;  %v2492_v52 = vld [vmem:[%s3500_s1 + $0x4cc] ss:$16 sps:$4 sm:$0xff]   ;;  %v2490_v25 = vld [vmem:[%s3500_s1 + $0x4c8] ss:$16 sps:$4 sm:$0xff]  }
  0xad   :  { %1842 = vmatprep.subr.bf16.mxu0 %v2540_v51  ;;  %v2495_v26 = vld [vmem:[%s3500_s1 + $0x4ec] ss:$16 sps:$4 sm:$0xff]   ;;  %v2565_v28 = vld [vmem:[%s3501_s2 + $0xf0] ss:$8 sps:$4 sm:$0xff]  }
  0xae   :  { %v2567_v27 = vld [vmem:[%s3501_s2 + $0xf4] ss:$8 sps:$4 sm:$0xff]   ;;  %v2493_v29 = vld [vmem:[%s3500_s1 + $0x4e8] ss:$16 sps:$4 sm:$0xff]   ;;  %v2570_v32 = vld [vmem:[%s3501_s2 + $0x104] ss:$8 sps:$4 sm:$0xff]  }
  0xaf   :  { %1371 = vmatpush1.bf16.msra.mxu1 %v2457_v48  ;;  %v2498_v30 = vld [vmem:[%s3500_s1 + $0x50c] ss:$16 sps:$4 sm:$0xff]   ;;  %v2496_v31 = vld [vmem:[%s3500_s1 + $0x508] ss:$16 sps:$4 sm:$0xff]  }
  0xb0   :  { %1372 = vmatprep.subr.bf16.mxu1 %v2462_v50  ;;  %1843 = vmatpush1.bf16.msra.mxu0 %v2538_v54  ;;  %v2501_v33 = vld [vmem:[%s3500_s1 + $0x52c] ss:$16 sps:$4 sm:$0xff]   ;;  %v2499_v34 = vld [vmem:[%s3500_s1 + $0x528] ss:$16 sps:$4 sm:$0xff]  }
  0xb1   :  { %1844 = vmatprep.subr.bf16.mxu0 %v2543_v56  ;;  %v2504_v36 = vld [vmem:[%s3500_s1 + $0x54c] ss:$16 sps:$4 sm:$0xff]   ;;  %v2502_v37 = vld [vmem:[%s3500_s1 + $0x548] ss:$16 sps:$4 sm:$0xff]  }
  0xb2   :  { %v2507_v38 = vld [vmem:[%s3500_s1 + $0x56c] ss:$16 sps:$4 sm:$0xff]   ;;  %v2505_v39 = vld [vmem:[%s3500_s1 + $0x568] ss:$16 sps:$4 sm:$0xff]  }
  0xb3   :  { %1373 = vmatpush1.bf16.msra.mxu1 %v2460_v53  ;;  %v2510_v40 = vld [vmem:[%s3500_s1 + $0x58c] ss:$16 sps:$4 sm:$0xff]   ;;  %v2508_v41 = vld [vmem:[%s3500_s1 + $0x588] ss:$16 sps:$4 sm:$0xff]  }
  0xb4   :  { %1374 = vmatprep.subr.bf16.mxu1 %v2465_v55  ;;  %1845 = vmatpush1.bf16.msra.mxu0 %v2541_v58  ;;  %v2513_v42 = vld [vmem:[%s3500_s1 + $0x5ac] ss:$16 sps:$4 sm:$0xff]   ;;  %v2511_v43 = vld [vmem:[%s3500_s1 + $0x5a8] ss:$16 sps:$4 sm:$0xff]  }
  0xb5   :  { %1846 = vmatprep.subr.bf16.mxu0 %v2546_v60  ;;  %v2516_v44 = vld [vmem:[%s3500_s1 + $0x5cc] ss:$16 sps:$4 sm:$0xff]   ;;  %v2514_v45 = vld [vmem:[%s3500_s1 + $0x5c8] ss:$16 sps:$4 sm:$0xff]  }
  0xb6   :  { %v2519_v46 = vld [vmem:[%s3500_s1 + $0x5ec] ss:$16 sps:$4 sm:$0xff]   ;;  %v2517_v47 = vld [vmem:[%s3500_s1 + $0x5e8] ss:$16 sps:$4 sm:$0xff]  }
  0xb7   :  { %1375 = vmatpush1.bf16.msra.mxu1 %v2463_v57 }
  0xb8   :  { %1376 = vmatprep.subr.bf16.mxu1 %v2468_v59  ;;  %1847 = vmatpush1.bf16.msra.mxu0 %v2544_v62 }
  0xb9   :  { %1848 = vmatprep.subr.bf16.mxu0 %v2549_v0 }
  0xbb   :  { %1377 = vmatpush1.bf16.msra.mxu1 %v2466_v61 }
  0xbc   :  { %1378 = vmatprep.subr.bf16.mxu1 %v2471_v63  ;;  %1849 = vmatpush1.bf16.msra.mxu0 %v2547_v2  ;;  %v2571_v2 = vld [vmem:[%s3501_s2 + $0x110] ss:$8 sps:$4 sm:$0xff]  }
  0xbd   :  { %1850 = vmatprep.subr.bf16.mxu0 %v2552_v4  ;;  %v2574_v4 = vld [vmem:[%s3501_s2 + $0x120] ss:$8 sps:$4 sm:$0xff]  }
  0xbf   :  { %1379 = vmatpush1.bf16.msra.mxu1 %v2469_v1  ;;  %v2573_v1 = vld [vmem:[%s3501_s2 + $0x114] ss:$8 sps:$4 sm:$0xff]  }
  0xc0   :  { %1389 = vmatprep.subr.bf16.mxu1 %v2474_v3  ;;  %1851 = vmatpush1.bf16.msra.mxu0 %v2550_v7  ;;  %v2576_v3 = vld [vmem:[%s3501_s2 + $0x124] ss:$8 sps:$4 sm:$0xff]  }
  0xc1   :  { %1852 = vmatprep.subr.bf16.mxu0 %v2555_v9  ;;  %v2582_v7 = vld [vmem:[%s3501_s2 + $0x144] ss:$8 sps:$4 sm:$0xff]   ;;  %v2580_v9 = vld [vmem:[%s3501_s2 + $0x140] ss:$8 sps:$4 sm:$0xff]  }
  0xc2   :  { %1381 = vmatmul.mubr.bf16.vlgmr.msra.gmra.mrb[4].mxu1 %v2895_v11  ;;  %v2558_v11 = vld [vmem:[%s3501_s2 + $0xc4] ss:$8 sps:$4 sm:$0xff]  }
  0xc3   :  { %1390 = vmatpush1.bf16.msra.mxu1 %v2472_v5  ;;  %1421 = vmatprep.mubr.bf16.mxu1 %v2969_v35  ;;  %v2478_v35 = vld [vmem:[%s3500_s1 + $0x448] ss:$16 sps:$4 sm:$0xff]   ;;  %v2579_v5 = vld [vmem:[%s3501_s2 + $0x134] ss:$8 sps:$4 sm:$0xff]  }
  0xc4   :  { %1391 = vmatprep.subr.bf16.mxu1 %v2477_v6  ;;  %1853 = vmatpush1.bf16.msra.mxu0 %v2553_v13  ;;  %v2577_v6 = vld [vmem:[%s3501_s2 + $0x130] ss:$8 sps:$4 sm:$0xff]   ;;  %v2588_v13 = vld [vmem:[%s3501_s2 + $0x164] ss:$8 sps:$4 sm:$0xff]  }
  0xc5   :  { %1854 = vmatprep.subr.bf16.mxu0 %v2558_v11  ;;  %v2586_v11 = vld [vmem:[%s3501_s2 + $0x160] ss:$8 sps:$4 sm:$0xff]  }
  0xc7   :  { %1392 = vmatpush1.bf16.msra.mxu1 %v2475_v10  ;;  %v2585_v10 = vld [vmem:[%s3501_s2 + $0x154] ss:$8 sps:$4 sm:$0xff]  }
  0xc8   :  { %1393 = vmatprep.subr.bf16.mxu1 %v2480_v12  ;;  %1855 = vmatpush1.bf16.msra.mxu0 %v2556_v16  ;;  %v2583_v12 = vld [vmem:[%s3501_s2 + $0x150] ss:$8 sps:$4 sm:$0xff]   ;;  %v2594_v16 = vld [vmem:[%s3501_s2 + $0x184] ss:$8 sps:$4 sm:$0xff]  }
  0xc9   :  { %1856 = vmatprep.subr.bf16.mxu0 %v2561_v17  ;;  %v2592_v17 = vld [vmem:[%s3501_s2 + $0x180] ss:$8 sps:$4 sm:$0xff]  }
  0xcb   :  { %1394 = vmatpush1.bf16.msra.mxu1 %v2478_v35  ;;  %v2591_v35 = vld [vmem:[%s3501_s2 + $0x174] ss:$8 sps:$4 sm:$0xff]  }
  0xcc   :  { %1395 = vmatprep.subr.bf16.mxu1 %v2483_v14  ;;  %1857 = vmatpush1.bf16.msra.mxu0 %v2559_v20  ;;  %v2589_v14 = vld [vmem:[%s3501_s2 + $0x170] ss:$8 sps:$4 sm:$0xff]   ;;  %v2600_v20 = vld [vmem:[%s3501_s2 + $0x1a4] ss:$8 sps:$4 sm:$0xff]  }
  0xcd   :  { %1858 = vmatprep.subr.bf16.mxu0 %v2564_v23  ;;  %v2604_v23 = vld [vmem:[%s3501_s2 + $0x1c0] ss:$8 sps:$4 sm:$0xff]  }
  0xcf   :  { %1396 = vmatpush1.bf16.msra.mxu1 %v2481_v18  ;;  %v2597_v18 = vld [vmem:[%s3501_s2 + $0x194] ss:$8 sps:$4 sm:$0xff]  }
  0xd0   :  { %1397 = vmatprep.subr.bf16.mxu1 %v2486_v19  ;;  %1859 = vmatpush1.bf16.msra.mxu0 %v2562_v24  ;;  %v2595_v19 = vld [vmem:[%s3501_s2 + $0x190] ss:$8 sps:$4 sm:$0xff]   ;;  %v2609_v24 = vld [vmem:[%s3501_s2 + $0x1d4] ss:$8 sps:$4 sm:$0xff]  }
  0xd1   :  { %1860 = vmatprep.subr.bf16.mxu0 %v2567_v27  ;;  %v2610_v27 = vld [vmem:[%s3501_s2 + $0x1e0] ss:$8 sps:$4 sm:$0xff]  }
  0xd3   :  { %1398 = vmatpush1.bf16.msra.mxu1 %v2484_v21  ;;  %v2598_v21 = vld [vmem:[%s3501_s2 + $0x1a0] ss:$8 sps:$4 sm:$0xff]  }
  0xd4   :  { %1399 = vmatprep.subr.bf16.mxu1 %v2489_v8  ;;  %1861 = vmatpush1.bf16.msra.mxu0 %v2565_v28  ;;  %v2603_v8 = vld [vmem:[%s3501_s2 + $0x1b4] ss:$8 sps:$4 sm:$0xff]  }
  0xd5   :  { %1871 = vmatprep.subr.bf16.mxu0 %v2570_v32  ;;  %v2615_v28 = vld [vmem:[%s3501_s2 + $0x1f4] ss:$8 sps:$4 sm:$0xff]  }
  0xd7   :  { %1400 = vmatpush1.bf16.msra.mxu1 %v2487_v22  ;;  %v2601_v22 = vld [vmem:[%s3501_s2 + $0x1b0] ss:$8 sps:$4 sm:$0xff]  }
  0xd8   :  { %1401 = vmatprep.subr.bf16.mxu1 %v2492_v52  ;;  %v2606_v52 = vld [vmem:[%s3501_s2 + $0x1c4] ss:$8 sps:$4 sm:$0xff]  }
  0xdb   :  { %1402 = vmatpush1.bf16.msra.mxu1 %v2490_v25  ;;  %v2607_v25 = vld [vmem:[%s3501_s2 + $0x1d0] ss:$8 sps:$4 sm:$0xff]  }
  0xdc   :  { %1403 = vmatprep.subr.bf16.mxu1 %v2495_v26  ;;  %v2612_v26 = vld [vmem:[%s3501_s2 + $0x1e4] ss:$8 sps:$4 sm:$0xff]  }
  0xdf   :  { %1404 = vmatpush1.bf16.msra.mxu1 %v2493_v29  ;;  %v2613_v29 = vld [vmem:[%s3501_s2 + $0x1f0] ss:$8 sps:$4 sm:$0xff]  }
  0xe0   :  { %1405 = vmatprep.subr.bf16.mxu1 %v2498_v30 }
  0xe3   :  { %1406 = vmatpush1.bf16.msra.mxu1 %v2496_v31 }
  0xe4   :  { %1407 = vmatprep.subr.bf16.mxu1 %v2501_v33 }
  0xe7   :  { %1408 = vmatpush1.bf16.msra.mxu1 %v2499_v34 }
  0xe8   :  { %1409 = vmatprep.subr.bf16.mxu1 %v2504_v36 }
  0xeb   :  { %1410 = vmatpush1.bf16.msra.mxu1 %v2502_v37 }
  0xec   :  { %1411 = vmatprep.subr.bf16.mxu1 %v2507_v38 }
  0xef   :  { %1412 = vmatpush1.bf16.msra.mxu1 %v2505_v39 }
  0xf0   :  { %1413 = vmatprep.subr.bf16.mxu1 %v2510_v40 }
  0xf3   :  { %1414 = vmatpush1.bf16.msra.mxu1 %v2508_v41  ;;  %v1922_v41 = vlaneseq }
  0xf4   :  { %1415 = vmatprep.subr.bf16.mxu1 %v2513_v42 }
  0xf5   :  { %v1923_v42 = vshrl.u32 %v1922_v41, 7 }
  0xf7   :  { %1416 = vmatpush1.bf16.msra.mxu1 %v2511_v43  ;;  %v1924_v43 = vsub.s32 0, %v1923_v42 }
  0xf8   :  { %1417 = vmatprep.subr.bf16.mxu1 %v2516_v44  ;;  %v1920_v44 = vld [vmem:[%s3502_s3] sm:$0x3]  ;;  %s2640_s3 = smov [#allocation2]  }
  0xf9   :  { %s1947_s30 = sshll.u32 %s2640_s3, 4  ;;  %s1948_s30 = int_to_ptr.vmem [resolvable:$true] %s1947_s30 }
  0xfa   :  { %s2616_s6 = scalar_lea.vmem %s1948_s30, 256  ;;  %p2621_p1 = scmp.lt.s32.totalorder %s1948_s30, %s1948_s30 }
  0xfb   :  { %1418 = vmatpush1.bf16.msra.mxu1 %v2514_v45  ;;  %v1928_v45 = vsub.s32 1, %v1923_v42  ;;  %p2617_p0 = scmp.ne.s32.totalorder %s1948_s30, %s2616_s6  ;;  %p2622_p2 = scmp.lt.s32.totalorder %s2616_s6, %s2616_s6 }
  0xfc   :  { %1419 = vmatprep.subr.bf16.mxu1 %v2519_v46 }
  0xfd   :  { %p2623_p3 = por %p2622_p2, %p2621_p1 }
  0xff   :  { %1420 = vmatpush1.bf16.msra.mxu1 %v2517_v47  ;;  %v1925_v47 = vrot.slane %v1920_v44, %v1924_v43  ;;  %p2624_p4 = pnand %p2623_p3, %p2617_p0 }
 0x102   :  { %1422 = vmatmul.mubr.bf16.vlgmr.msra.gmra.mrb[4].mxu1 %v3092_v15  ;;  %v2568_v15 = vld [vmem:[%s3501_s2 + $0x100] ss:$8 sps:$4 sm:$0xff]  }
 0x115   :  { %v1218_v48 = vpop.f32.mrb[0].mxu1 }
 0x116   :  { %v1220_v49 = vpop.f32.mrb[1].mxu1 }
 0x117   :  { %v1222_v50 = vpop.f32.mrb[2].mxu1 }
 0x118   :  { %v1223_v51 = vpop.f32.mrb[3].mxu1  ;;  %v1929_v50 = vrot.slane %v1920_v44, %v1928_v45 }
 0x156   :  { %v1300_v53 = vpop.f32.mrb[0].mxu0 }
 0x157   :  { %v2213_v54 = vadd.f32 %v1300_v53, %v1218_v48  ;;  %v1302_v55 = vpop.f32.mrb[1].mxu0 }
 0x158   :  { %v2214_v56 = vadd.f32 %v1302_v55, %v1220_v49  ;;  %v1304_v57 = vpop.f32.mrb[2].mxu0 }
 0x159   :  { %vm1430_vm0 = vcmp.gt.f32.partialorder %v2213_v54, 0.0  ;;  %v1434_v58 = vmul.f32 0.01, %v2213_v54  ;;  %v1305_v59 = vpop.f32.mrb[3].mxu0 }
 0x15a   :  { %vm1431_vm1 = vcmp.gt.f32.partialorder %v2214_v56, 0.0  ;;  %v1435_v60 = vmul.f32 0.01, %v2214_v56 }
 0x15b   :  { %v1438_v61 = vsel %vm1430_vm0, %v2213_v54, %v1434_v58 }
 0x15c   :  { %v1439_v62 = vsel %vm1431_vm1, %v2214_v56, %v1435_v60  ;;  %v1442_v0 = vpack.c.bf16 %v1438_v61, %v1438_v61 }
 0x15d   :  { %v1443_v63 = vpack.c.bf16 %v1439_v62, %v1439_v62 }
 0x15f   :  { %1862 = vmatprep.mubr.bf16.mxu0 %v1443_v63 }
 0x160   :  { %1863 = vmatmul.mubr.bf16.vlgmr.msra.gmra.mrb[4].mxu0 %v1442_v0 }
 0x161   :  { %1872 = vmatpush1.bf16.msra.mxu0 %v2568_v15 }
 0x162   :  { %1873 = vmatprep.subr.bf16.mxu0 %v2573_v1 }
 0x165   :  { %1874 = vmatpush1.bf16.msra.mxu0 %v2571_v2 }
 0x166   :  { %1875 = vmatprep.subr.bf16.mxu0 %v2576_v3 }
 0x169   :  { %1876 = vmatpush1.bf16.msra.mxu0 %v2574_v4 }
 0x16a   :  { %1877 = vmatprep.subr.bf16.mxu0 %v2579_v5 }
 0x16d   :  { %1878 = vmatpush1.bf16.msra.mxu0 %v2577_v6 }
 0x16e   :  { %1879 = vmatprep.subr.bf16.mxu0 %v2582_v7 }
 0x171   :  { %1880 = vmatpush1.bf16.msra.mxu0 %v2580_v9 }
 0x172   :  { %1881 = vmatprep.subr.bf16.mxu0 %v2585_v10 }
 0x175   :  { %1882 = vmatpush1.bf16.msra.mxu0 %v2583_v12 }
 0x176   :  { %1883 = vmatprep.subr.bf16.mxu0 %v2588_v13 }
 0x179   :  { %1884 = vmatpush1.bf16.msra.mxu0 %v2586_v11 }
 0x17a   :  { %1885 = vmatprep.subr.bf16.mxu0 %v2591_v35 }
 0x17d   :  { %1886 = vmatpush1.bf16.msra.mxu0 %v2589_v14 }
 0x17e   :  { %1887 = vmatprep.subr.bf16.mxu0 %v2594_v16 }
 0x181   :  { %1888 = vmatpush1.bf16.msra.mxu0 %v2592_v17 }
 0x182   :  { %1889 = vmatprep.subr.bf16.mxu0 %v2597_v18 }
 0x185   :  { %1890 = vmatpush1.bf16.msra.mxu0 %v2595_v19 }
 0x186   :  { %1891 = vmatprep.subr.bf16.mxu0 %v2600_v20 }
 0x189   :  { %1892 = vmatpush1.bf16.msra.mxu0 %v2598_v21 }
 0x18a   :  { %1893 = vmatprep.subr.bf16.mxu0 %v2603_v8 }
 0x18d   :  { %1894 = vmatpush1.bf16.msra.mxu0 %v2601_v22 }
 0x18e   :  { %1895 = vmatprep.subr.bf16.mxu0 %v2606_v52 }
 0x191   :  { %1896 = vmatpush1.bf16.msra.mxu0 %v2604_v23 }
 0x192   :  { %1897 = vmatprep.subr.bf16.mxu0 %v2609_v24 }
 0x195   :  { %1898 = vmatpush1.bf16.msra.mxu0 %v2607_v25 }
 0x196   :  { %1899 = vmatprep.subr.bf16.mxu0 %v2612_v26 }
 0x199   :  { %1900 = vmatpush1.bf16.msra.mxu0 %v2610_v27 }
 0x19a   :  { %1901 = vmatprep.subr.bf16.mxu0 %v2615_v28 }
 0x19d   :  { %1902 = vmatpush1.bf16.msra.mxu0 %v2613_v29 }
 0x1d5   :  { %v1423_v30 = vpop.f32.mrb[4].mxu1 }
 0x1d6   :  { %vm1432_vm2 = vcmp.gt.f32.partialorder %v1423_v30, 0.0  ;;  %v1436_v31 = vmul.f32 0.01, %v1423_v30  ;;  %v1425_v32 = vpop.f32.mrb[5].mxu1 }
 0x1d7   :  { %vm1433_vm3 = vcmp.gt.f32.partialorder %v1425_v32, 0.0  ;;  %v1437_v33 = vmul.f32 0.01, %v1425_v32  ;;  %v1427_v34 = vpop.f32.mrb[6].mxu1 }
 0x1d8   :  { %v1440_v36 = vsel %vm1432_vm2, %v1423_v30, %v1436_v31  ;;  %v1428_v37 = vpop.f32.mrb[7].mxu1 }
 0x1d9   :  { %v1441_v38 = vsel %vm1433_vm3, %v1425_v32, %v1437_v33  ;;  %v1444_v40 = vpack.c.bf16 %v1440_v36, %v1440_v36 }
 0x1da   :  { %v1445_v39 = vpack.c.bf16 %v1441_v38, %v1441_v38 }
 0x1dc   :  { %1903 = vmatprep.mubr.bf16.mxu0 %v1445_v39 }
 0x1dd   :  { %1904 = vmatmul.mubr.bf16.vlgmr.msra.gmra.mrb[4].mxu0 %v1444_v40 }
 0x2b0   :  { %v1905_v46 = vpop.f32.mrb[4].mxu0 }
 0x2b1   :  { %vm1912_vm4 = vcmp.gt.f32.partialorder %v1905_v46, 0.0  ;;  %v1914_v48 = vmul.f32 0.01, %v1905_v46  ;;  %v1907_v49 = vpop.f32.mrb[5].mxu0 }
 0x2b2   :  { %vm1913_vm5 = vcmp.gt.f32.partialorder %v1907_v49, 0.0  ;;  %v1915_v51 = vmul.f32 0.01, %v1907_v49  ;;  %v1909_v53 = vpop.f32.mrb[6].mxu0 }
 0x2b3   :  { %v1910_v54 = vpop.f32.mrb[7].mxu0  ;;  %v1916_v55 = vsel %vm1912_vm4, %v1905_v46, %v1914_v48 }
 0x2b4   :  { %v1917_v56 = vsel %vm1913_vm5, %v1907_v49, %v1915_v51  ;;  %v1932_v57 = vmul.f32 %v1925_v47, %v1916_v55  ;;  %1918 = vst [vmem:[#allocation2] sm:$0xff] %v1916_v55 }
 0x2b5   :  { %v1933_v58 = vmul.f32 %v1929_v50, %v1917_v56  ;;  %1919 = vst [vmem:[#allocation2 + $0x8] sm:$0xff] %v1917_v56 }
 0x2b7   :  { %v1934_v59 = vadd.f32 %v1933_v58, %v1932_v57 }
 0x2b9   :  { %1935 = vadd.xlane.f32.xlu0 %v1934_v59 }
 0x2ba   :  { %2627 = shalt.err (!%p2624_p4)
}
 0x2bb   :  { %s2628_s9 = scalar_lea.hbm %s3504_s5, 256 }
 0x2bc   :  { %p2629_p5 = scmp.ne.s32.totalorder %s3504_s5, %s2628_s9  ;;  %p2632_p6 = scmp.lt.u32.totalorder %s2628_s9, %s3504_s5 }
 0x2be   :  { %p2634_p7 = pnand %p2632_p6, %p2629_p5 }
 0x2c0   :  { %2637 = shalt.err (!%p2634_p7)
}
 0x2c1   :  { %1950 = dma.vmem_to_hbm [thread:$0]  %s1948_s30, 256, %s3504_s5, [#allocation3]   ;;  %vm1937_vm6 = vcmask 7168  }
 0x346   :  { %v1936_v60 = vpop.xlane.xlu0 %1935 }
 0x347   :  { %1938 = vst.msk [vmem:[%s3503_s4] sm:$0xff] %vm1937_vm6, %v1936_v60 }
 0x348   :  { %2638 = dma.done.wait [#allocation3], 256  }
 0x349   :  { %2639 = vsyncadd [#allocation3], 4294967040 }
 0x34a   :  { %1956 = vsyncpa [#allocation3], 1 }

</bundles_post_ra>
